<compile_context>
chip_gen: v6e
topology: v6e:2x2x1
jax: 0.10.0
libtpu: 0.0.40
codegen_flags: <defaults>
</compile_context>

<pallas_src>
import numpy as np
import jax
import jax.numpy as jnp
from jax.experimental import pallas as pl
from jax.experimental.pallas import tpu as pltpu

_LANE = 128
_TARGET_BLOCK_BYTES = 4 * 1024 * 1024      # ~4 MiB of x per block (v6e/v7x sweet spot)
_STEP_OVERHEAD_BYTES = 500_000             # ~0.35us/step ~= 0.5 MB of HBM traffic @1.4TB/s
_VMEM_HEADROOM_BYTES = 8 * 1024 * 1024
_VMEM_LIMIT_FLOOR = 32 * 1024 * 1024
_VMEM_LIMIT_CAP = 48 * 1024 * 1024         # below v7x's 64 MiB physical VMEM


def _build_positional_encoding(d_model: int, max_len: int = 100) -> jnp.ndarray:
    """(max_len, d_model) sinusoidal table matching the PyTorch __init__
    (d_model assumed even, as in the original module)."""
    position = np.arange(0, max_len, dtype=np.float32)[:, None]
    div_term = np.exp(
        np.arange(0, d_model, 2, dtype=np.float32) * (-np.log(10000.0) / d_model)
    )
    angles = position * div_term
    enc = np.zeros((max_len, d_model), dtype=np.float32)
    enc[:, 0::2] = np.sin(angles)
    enc[:, 1::2] = np.cos(angles)
    return jnp.asarray(enc)


def _divisors(n: int):
    return [d for d in range(1, n + 1) if n % d == 0]


def _sublane_base(itemsize: int) -> int:
    # Packed sublane granularity: 8 for 4-byte, 16 for 2-byte, 32 for 1-byte dtypes.
    return max(8, 32 // max(itemsize, 1))


def _pick_seq_split(S: int, D: int):
    """Smallest divisor s_inner of S with (s_inner * D) % 128 == 0; None if none."""
    for s_inner in _divisors(S):
        if (s_inner * D) % _LANE == 0:
            return s_inner
    return None


def _pick_tiles(B: int, s_outer: int, cols: int, itemsize: int):
    """Pick (tr, tc). tr = k*s_outer (k | B) so pe row-tiling is exact; tc is a
    multiple of 128 dividing cols. Chosen by a simple HBM cost model."""
    rows = B * s_outer
    sub = _sublane_base(itemsize)

    def _ok(k, base):
        tr = k * s_outer
        return tr % base == 0 or tr == rows      # (8,128) rule: %8 or full dim

    ks = ([k for k in _divisors(B) if _ok(k, sub)]
          or [k for k in _divisors(B) if _ok(k, 8)]
          or [B])
    tcs = [d * _LANE for d in _divisors(cols // _LANE)]

    best, best_cost = None, None
    for k in ks:
        tr = k * s_outer
        for tc in tcs:
            if tr * tc * itemsize > _TARGET_BLOCK_BYTES:
                continue
            steps = (rows // tr) * (cols // tc)
            # x read + out write + pe re-read (once per column tile) + per-step overhead
            cost = 2 * rows * cols * itemsize + tr * cols * 4 + steps * _STEP_OVERHEAD_BYTES
            if steps < 2:                        # prefer >=2 steps: v7x has 2 TensorCores
                cost *= 2
            if best_cost is None or cost < best_cost:
                best, best_cost = (tr, tc), cost
    if best is None:                             # every block over target: take smallest
        best = (min(k * s_outer for k in ks), min(tcs))
    return best


def _add_pe_kernel(x_ref, pe_ref, o_ref):
    # x_ref/o_ref: (TR, TC) blocks in x.dtype; pe_ref: (TR, TC) f32 block.
    # Plain vreg+vreg VPU add, accumulation in f32 (matches the f32 pe buffer).
    o_ref[...] = (x_ref[...].astype(jnp.float32) + pe_ref[...]).astype(o_ref.dtype)


def positional_encoding_forward(x: jnp.ndarray, pe_table: jnp.ndarray) -> jnp.ndarray:
    """x: (B, S, D); pe_table: (max_len, D) f32. Returns x + pe[:S] (broadcast over B)."""
    B, S, D = x.shape
    if S > pe_table.shape[0]:
        raise ValueError(f"seq_len {S} exceeds max_len {pe_table.shape[0]}")

    itemsize = jnp.dtype(x.dtype).itemsize

    s_inner = _pick_seq_split(S, D)
    if s_inner is None:            # no 128-aligned split of S*D: pad the lane dim
        s_inner = S
    s_outer = S // s_inner
    rows = B * s_outer
    cols_raw = s_inner * D
    cols = ((cols_raw + _LANE - 1) // _LANE) * _LANE
    pad = cols - cols_raw

    # Sublane-dense 2-D views (free reshapes on contiguous row-major arrays).
    x2 = x.reshape(rows, cols_raw)
    pe2 = pe_table[:S, :].astype(jnp.float32).reshape(s_outer, cols_raw)
    if pad:
        x2 = jnp.pad(x2, ((0, 0), (0, pad)))
        pe2 = jnp.pad(pe2, ((0, 0), (0, pad)))

    tr, tc = _pick_tiles(B, s_outer, cols, itemsize)
    k = tr // s_outer
    # pe tiled to exactly one row-block: kernel add is shape-for-shape, and the
    # pe block (index (0, j)) stays VMEM-resident across the inner row loop.
    pe_tiled = jnp.tile(pe2, (k, 1))

    grid = (cols // tc, rows // tr)   # columns outer -> pe resident across rows

    x_block_bytes = tr * tc * itemsize
    pe_block_bytes = tr * tc * 4
    footprint = 4 * x_block_bytes + 2 * pe_block_bytes   # 2x x + 2x out + 2x pe buffers
    vmem_limit = int(min(_VMEM_LIMIT_CAP,
                         max(_VMEM_LIMIT_FLOOR, footprint + _VMEM_HEADROOM_BYTES)))

    out2 = pl.pallas_call(
        _add_pe_kernel,
        out_shape=jax.ShapeDtypeStruct((rows, cols), x.dtype),
        grid=grid,
        in_specs=[
            pl.BlockSpec((tr, tc), lambda j, i: (i, j)),   # x
            pl.BlockSpec((tr, tc), lambda j, i: (0, j)),   # pe (constant over rows)
        ],
        out_specs=pl.BlockSpec((tr, tc), lambda j, i: (i, j)),
        compiler_params=pltpu.CompilerParams(
            dimension_semantics=("parallel", "parallel"),
            vmem_limit_bytes=vmem_limit,
        ),
        cost_estimate=pl.CostEstimate(
            flops=rows * cols,
            transcendentals=0,
            bytes_accessed=2 * rows * cols * itemsize + tr * cols * 4,
        ),
    )(x2, pe_tiled)

    if pad:
        out2 = out2[:, :cols_raw]
    return out2.reshape(B, S, D)


if __name__ == "__main__":
    # Small shapes consistent with the module's forward: (batch, seq, d_model)
    batch, seq, d_model, max_len = 2, 8, 32, 100

    key = jax.random.PRNGKey(0)
    x = jax.random.normal(key, (batch, seq, d_model), dtype=jnp.float32)

    pe_table = _build_positional_encoding(d_model, max_len)

    out = positional_encoding_forward(x, pe_table)
    out = jax.block_until_ready(out)

    # Reference check (plain JAX, same math as the PyTorch forward).
    ref = x + pe_table[None, :seq, :]
    np.testing.assert_allclose(np.asarray(out), np.asarray(ref), rtol=1e-6, atol=1e-6)

    print("KERNEL_OK")
</pallas_src>

<mosaic_0001>
module attributes {stable_mosaic.version = 11 : i64} {
  func.func @_add_pe_kernel(%arg0: i32, %arg1: i32, %arg2: memref<4x128xf32, #tpu.memory_space<vmem>>, %arg3: memref<4x128xf32, #tpu.memory_space<vmem>>, %arg4: memref<4x128xf32, #tpu.memory_space<vmem>>) attributes {dimension_semantics = [#tpu.dimension_semantics<parallel>, #tpu.dimension_semantics<parallel>], iteration_bounds = array<i64: 1, 1>, scalar_prefetch = 0 : i64, scratch_operands = 0 : i64, tpu.core_type = #tpu.core_type<tc>, window_params = [{transform_indices = @transform_0, window_bounds = array<i64: 4, 128>}, {transform_indices = @transform_1, window_bounds = array<i64: 4, 128>}, {transform_indices = @transform_2, window_bounds = array<i64: 4, 128>}]} {
    %c0 = arith.constant 0 : index
    %c0_0 = arith.constant 0 : index
    %0 = vector.load %arg2[%c0, %c0_0] : memref<4x128xf32, #tpu.memory_space<vmem>>, vector<4x128xf32>
    %c0_1 = arith.constant 0 : index
    %c0_2 = arith.constant 0 : index
    %1 = vector.load %arg3[%c0_1, %c0_2] : memref<4x128xf32, #tpu.memory_space<vmem>>, vector<4x128xf32>
    %2 = arith.addf %0, %1 : vector<4x128xf32>
    %c0_3 = arith.constant 0 : index
    %c0_4 = arith.constant 0 : index
    %3 = vector.load %arg4[%c0_3, %c0_4] : memref<4x128xf32, #tpu.memory_space<vmem>>, vector<4x128xf32>
    tpu.vector_store %arg4[%c0_3, %c0_4], %2 {strides = array<i32>} : memref<4x128xf32, #tpu.memory_space<vmem>>, vector<4x128xf32>,
    return
  }
  func.func @transform_0(%arg0: i32, %arg1: i32) -> (i32, i32) {
    %c0_i32 = arith.constant 0 : i32
    return %arg1, %arg0 : i32, i32
  }
  func.func @transform_1(%arg0: i32, %arg1: i32) -> (i32, i32) {
    %c0_i32 = arith.constant 0 : i32
    %c0_i32_0 = arith.constant 0 : i32
    return %c0_i32, %arg0 : i32, i32
  }
  func.func @transform_2(%arg0: i32, %arg1: i32) -> (i32, i32) {
    %c0_i32 = arith.constant 0 : i32
    return %arg1, %arg0 : i32, i32
  }
}

</mosaic_0001>

<bundles_post_ra>
// kernel: tpu_custom_call.1
= control target key start
LH: loop header
LB: loop body
LE: loop exit
PB: predicated region body
PF: predicated region fallthrough
CT: control target
= control target key end

     0   :  { %7 = vsyncpa [#allocation3], 0  ;;  %s152_s0 = inlined_call_operand.hbm [shape: f32[4,128], index: 0, kind: input, shape index: {}]   ;;  %s153_s1 = inlined_call_operand.hbm [shape: f32[4,128], index: 1, kind: input, shape index: {}]   ;;  %s154_s2 = inlined_call_operand.hbm [shape: f32[4,128], index: 2, kind: output, shape index: {}]  }
   0x1   :  { %8 = vsyncpa [#allocation6], 0 }
   0x2   :  { %9 = vsyncpa [#allocation4], 0  ;;  %s125_s9 = smov [#allocation2]   ;;  %s126_s11 = smov [#allocation5]  }
   0x3   :  { %s16_s10 = sshll.u32 %s125_s9, 4  ;;  %s26_s12 = sshll.u32 %s126_s11, 4  ;;  %s17_s10 = int_to_ptr.vmem [resolvable:$true] %s16_s10  ;;  %s27_s12 = int_to_ptr.vmem [resolvable:$true] %s26_s12 }
   0x4   :  { %s67_s13 = scalar_lea.vmem %s17_s10, 64  ;;  %p72_p1 = scmp.lt.s32.totalorder %s17_s10, %s17_s10 }
   0x5   :  { %p68_p0 = scmp.ne.s32.totalorder %s17_s10, %s67_s13  ;;  %p73_p2 = scmp.lt.s32.totalorder %s67_s13, %s67_s13 }
   0x7   :  { %p74_p3 = por %p73_p2, %p72_p1 }
   0x9   :  { %p75_p4 = pnand %p74_p3, %p68_p0 }
   0xb   :  { %78 = shalt.err (!%p75_p4)
}
   0xc   :  { %19 = dma.hbm_to_vmem [thread:$0]  %s152_s0, 64, %s17_s10, [#allocation3]  }
   0xd   :  { %s87_s16 = scalar_lea.vmem %s27_s12, 64  ;;  %p92_p6 = scmp.lt.s32.totalorder %s27_s12, %s27_s12 }
   0xe   :  { %p88_p5 = scmp.ne.s32.totalorder %s27_s12, %s87_s16  ;;  %p93_p7 = scmp.lt.s32.totalorder %s87_s16, %s87_s16 }
  0x10   :  { %p94_p8 = por %p93_p7, %p92_p6 }
  0x12   :  { %p95_p9 = pnand %p94_p8, %p88_p5 }
  0x14   :  { %98 = shalt.err (!%p95_p9)
}
  0x15   :  { %29 = dma.hbm_to_vmem [thread:$0]  %s153_s1, 64, %s27_s12, [#allocation6]  }
  0x16   :  { %119 = dma.done.wait [#allocation3], 64  }
  0x17   :  { %120 = vsyncadd [#allocation3], 4294967232 }
  0x18   :  { %121 = dma.done.wait [#allocation6], 64  }
  0x19   :  { %122 = vsyncadd [#allocation6], 4294967232  ;;  %s127_s19 = smov [#allocation7]   ;;  %v36_v0 = vld [vmem:[#allocation2] sm:$0xf] }
  0x1a   :  { %s46_s20 = sshll.u32 %s127_s19, 4  ;;  %v37_v1 = vld [vmem:[#allocation5] sm:$0xf]  ;;  %s47_s20 = int_to_ptr.vmem [resolvable:$true] %s46_s20 }
  0x1b   :  { %v38_v2 = vadd.f32 %v37_v1, %v36_v0  ;;  %s99_s0 = scalar_lea.vmem %s47_s20, 64  ;;  %p104_p11 = scmp.lt.s32.totalorder %s47_s20, %s47_s20 }
  0x1c   :  { %p100_p10 = scmp.ne.s32.totalorder %s47_s20, %s99_s0  ;;  %p105_p12 = scmp.lt.s32.totalorder %s99_s0, %s99_s0 }
  0x1d   :  { %39 = vst [vmem:[#allocation7] sm:$0xf] %v38_v2 }
  0x1e   :  { %p106_p13 = por %p105_p12, %p104_p11 }
  0x20   :  { %p107_p0 = pnand %p106_p13, %p100_p10 }
  0x22   :  { %110 = shalt.err (!%p107_p0)
}
  0x23   :  { %49 = dma.vmem_to_hbm [thread:$0]  %s47_s20, 64, %s154_s2, [#allocation4]  }
  0x24   :  { %123 = dma.done.wait [#allocation4], 64  }
  0x25   :  { %124 = vsyncadd [#allocation4], 4294967232 }
  0x26   :  { %53 = vsyncpa [#allocation3], 1 }
  0x27   :  { %54 = vsyncpa [#allocation6], 1 }
  0x28   :  { %55 = vsyncpa [#allocation4], 1 }

</bundles_post_ra>
